<compile_context>
chip_gen: v7x
topology: tpu7x:2x2x1
jax: 0.10.0
libtpu: 0.0.40
codegen_flags: <defaults>
</compile_context>

<pallas_src>
import jax
import jax.numpy as jnp
from jax.experimental import pallas as pl
from jax.experimental.pallas import tpu as pltpu


def _resnet_block_kernel(x_ref, m1_ref, b1_ref, m2_ref, b2_ref, o_ref):
    # x_ref : (1, H, W*C)   input image, channels flattened onto the lane axis
    # m*_ref: (3, W*C, W*C) block-banded conv matrices (one per kernel row dy)
    # b*_ref: (1, W*C)      bias tiled over W
    # o_ref : (1, H, W*C)   output
    H, WC = x_ref.shape[1], x_ref.shape[2]
    x = x_ref[0].astype(jnp.float32)                          # (H, WC)

    def conv3x3_relu(a, m_ref, b_ref):
        # Height-border zero padding via zero-row concat (no padded scratch).
        zrow = jnp.zeros((1, WC), jnp.float32)
        a_up = jnp.concatenate([zrow, a[:H - 1, :]], axis=0)  # a_up[h] = a[h-1]
        a_dn = jnp.concatenate([a[1:, :], zrow], axis=0)      # a_dn[h] = a[h+1]
        # Bias-initialized accumulator (no separate +bias pass).
        acc = jnp.broadcast_to(b_ref[...], (H, WC)).astype(jnp.float32)
        acc = acc + jnp.dot(a_up, m_ref[0], preferred_element_type=jnp.float32)
        acc = acc + jnp.dot(a,    m_ref[1], preferred_element_type=jnp.float32)
        acc = acc + jnp.dot(a_dn, m_ref[2], preferred_element_type=jnp.float32)
        return jnp.maximum(acc, 0.0)                          # ReLU

    h1 = conv3x3_relu(x, m1_ref, b1_ref)
    h2 = conv3x3_relu(h1, m2_ref, b2_ref)
    # Residual add reuses the already-loaded x block (no second input DMA).
    o_ref[0] = (h2 + x).astype(o_ref.dtype)


def _conv_band_matrices(w_hwio, width):
    """Pack a (3,3,Cin,Cout) conv kernel into 3 block-banded (W*Cin, W*Cout)
    matrices so that kernel-row dy of the 3x3 conv is `x_row_slab @ M[dy]`.
    The band structure bakes in the zero padding at left/right image borders."""
    kh, kw, cin, cout = w_hwio.shape
    mats = []
    for dy in range(kh):
        m = jnp.zeros((width * cin, width * cout), jnp.float32)
        for dx in range(kw):
            # ones at block positions (w + dx - 1, w) for valid w
            shift = jnp.eye(width, k=-(dx - 1), dtype=jnp.float32)
            m = m + jnp.kron(shift, w_hwio[dy, dx].astype(jnp.float32))
        mats.append(m)
    return jnp.stack(mats)                                     # (3, W*Cin, W*Cout)


def resnet_block_pallas(x_nhwc, w1, b1, w2, b2):
    """x_nhwc: (N, H, W, C) float32; w*: (3,3,C,C) HWIO; b*: (C,)."""
    N, H, W, C = x_nhwc.shape
    WC = W * C
    x2d = x_nhwc.reshape(N, H, WC)            # contiguous, free reshape
    m1 = _conv_band_matrices(w1, W)
    m2 = _conv_band_matrices(w2, W)
    b1r = jnp.tile(b1.astype(jnp.float32), W).reshape(1, WC)
    b2r = jnp.tile(b2.astype(jnp.float32), W).reshape(1, WC)

    out2d = pl.pallas_call(
        _resnet_block_kernel,
        out_shape=jax.ShapeDtypeStruct((N, H, WC), x_nhwc.dtype),
        grid_spec=pltpu.PrefetchScalarGridSpec(
            num_scalar_prefetch=0,
            grid=(N,),
            in_specs=[
                pl.BlockSpec((1, H, WC), lambda n: (n, 0, 0)),
                pl.BlockSpec((3, WC, WC), lambda n: (0, 0, 0)),
                pl.BlockSpec((1, WC), lambda n: (0, 0)),
                pl.BlockSpec((3, WC, WC), lambda n: (0, 0, 0)),
                pl.BlockSpec((1, WC), lambda n: (0, 0)),
            ],
            out_specs=pl.BlockSpec((1, H, WC), lambda n: (n, 0, 0)),
        ),
        compiler_params=pltpu.CompilerParams(
            dimension_semantics=("parallel",)),
    )(x2d, m1, b1r, m2, b2r)
    return out2d.reshape(N, H, W, C)


def resnet_block_reference(x_nhwc, w1, b1, w2, b2):
    """Pure-JAX reference (matches the PyTorch forward, NHWC layout)."""
    def conv_relu(x, w, b):
        y = jax.lax.conv_general_dilated(
            x, w, window_strides=(1, 1), padding="SAME",
            dimension_numbers=("NHWC", "HWIO", "NHWC"))
        return jnp.maximum(y + b.reshape(1, 1, 1, -1), 0.0)

    h = conv_relu(x_nhwc, w1, b1)
    h = conv_relu(h, w2, b2)
    return h + x_nhwc


if __name__ == "__main__":
    # Shapes consistent with build_resnet_block(channels=4): x is NCHW (2,4,16,16)
    N, C, H, W = 2, 4, 16, 16
    key = jax.random.PRNGKey(0)
    k_x, k_w1, k_b1, k_w2, k_b2 = jax.random.split(key, 5)

    x_nchw = jax.random.normal(k_x, (N, C, H, W), dtype=jnp.float32)

    # Conv2d(C, C, 3) weights in HWIO layout, deterministic init.
    fan_in = C * 3 * 3
    scale = 1.0 / jnp.sqrt(jnp.float32(fan_in))
    w1 = jax.random.uniform(k_w1, (3, 3, C, C), jnp.float32, -scale, scale)
    b1 = jax.random.uniform(k_b1, (C,), jnp.float32, -scale, scale)
    w2 = jax.random.uniform(k_w2, (3, 3, C, C), jnp.float32, -scale, scale)
    b2 = jax.random.uniform(k_b2, (C,), jnp.float32, -scale, scale)

    # NCHW -> NHWC for the kernel, back to NCHW at the end.
    x_nhwc = jnp.transpose(x_nchw, (0, 2, 3, 1))

    out_nhwc = resnet_block_pallas(x_nhwc, w1, b1, w2, b2)
    out_nhwc = jax.block_until_ready(out_nhwc)
    out_nchw = jnp.transpose(out_nhwc, (0, 3, 1, 2))

    ref_nhwc = resnet_block_reference(x_nhwc, w1, b1, w2, b2)
    assert out_nchw.shape == (N, C, H, W)
    assert jnp.allclose(out_nhwc, ref_nhwc, atol=1e-4, rtol=1e-4), "mismatch vs reference"

    print("KERNEL_OK")
</pallas_src>

<mosaic_0001>
module attributes {stable_mosaic.version = 11 : i64} {
  func.func @_resnet_block_kernel(%arg0: i32, %arg1: memref<1x16x64xf32, #tpu.memory_space<vmem>>, %arg2: memref<3x64x64xf32, #tpu.memory_space<vmem>>, %arg3: memref<1x64xf32, #tpu.memory_space<vmem>>, %arg4: memref<3x64x64xf32, #tpu.memory_space<vmem>>, %arg5: memref<1x64xf32, #tpu.memory_space<vmem>>, %arg6: memref<1x16x64xf32, #tpu.memory_space<vmem>>) attributes {dimension_semantics = [#tpu.dimension_semantics<parallel>], iteration_bounds = array<i64: 2>, scalar_prefetch = 0 : i64, scratch_operands = 0 : i64, tpu.core_type = #tpu.core_type<tc>, window_params = [{transform_indices = @transform_0, window_bounds = array<i64: 1, 16, 64>}, {pipeline_mode = #tpu.pipeline_mode<synchronous>, transform_indices = @transform_1, window_bounds = array<i64: 3, 64, 64>}, {pipeline_mode = #tpu.pipeline_mode<synchronous>, transform_indices = @transform_2, window_bounds = array<i64: 1, 64>}, {pipeline_mode = #tpu.pipeline_mode<synchronous>, transform_indices = @transform_3, window_bounds = array<i64: 3, 64, 64>}, {pipeline_mode = #tpu.pipeline_mode<synchronous>, transform_indices = @transform_4, window_bounds = array<i64: 1, 64>}, {transform_indices = @transform_5, window_bounds = array<i64: 1, 16, 64>}]} {
    %c0 = arith.constant 0 : index
    %c0_0 = arith.constant 0 : index
    %c0_1 = arith.constant 0 : index
    %0 = vector.load %arg1[%c0, %c0_0, %c0_1] : memref<1x16x64xf32, #tpu.memory_space<vmem>>, vector<1x16x64xf32>
    %1 = vector.shape_cast %0 : vector<1x16x64xf32> to vector<16x64xf32>
    %cst = arith.constant 0.000000e+00 : f32
    %2 = vector.broadcast %cst : f32 to vector<1x64xf32>
    %3 = vector.extract_strided_slice %1 {offsets = [0, 0], sizes = [15, 64], strides = [1, 1]} : vector<16x64xf32> to vector<15x64xf32>
    %4 = tpu.concatenate %2, %3 in 0 : vector<1x64xf32>, vector<15x64xf32> -> vector<16x64xf32>
    %5 = vector.extract_strided_slice %1 {offsets = [1, 0], sizes = [15, 64], strides = [1, 1]} : vector<16x64xf32> to vector<15x64xf32>
    %6 = tpu.concatenate %5, %2 in 0 : vector<15x64xf32>, vector<1x64xf32> -> vector<16x64xf32>
    %c0_2 = arith.constant 0 : index
    %c0_3 = arith.constant 0 : index
    %7 = vector.load %arg3[%c0_2, %c0_3] : memref<1x64xf32, #tpu.memory_space<vmem>>, vector<1x64xf32>
    %8 = vector.shape_cast %7 : vector<1x64xf32> to vector<1x64xf32>
    %9 = vector.broadcast %8 : vector<1x64xf32> to vector<16x64xf32>
    %c0_4 = arith.constant 0 : index
    %c0_5 = arith.constant 0 : index
    %c0_6 = arith.constant 0 : index
    %10 = vector.load %arg2[%c0_4, %c0_5, %c0_6] : memref<3x64x64xf32, #tpu.memory_space<vmem>>, vector<1x64x64xf32>
    %11 = vector.shape_cast %10 : vector<1x64x64xf32> to vector<64x64xf32>
    %cst_7 = arith.constant dense<0.000000e+00> : vector<16x64xf32>
    %12 = tpu.matmul %4, %11, %cst_7 {dimension_numbers = #tpu.dot_dimension_numbers<[1], [0], [0], [1], [0, 0, 1, 1], [], []>} : vector<16x64xf32>, vector<64x64xf32>, vector<16x64xf32> -> vector<16x64xf32>
    %13 = arith.addf %9, %12 : vector<16x64xf32>
    %c1 = arith.constant 1 : index
    %c0_8 = arith.constant 0 : index
    %c0_9 = arith.constant 0 : index
    %14 = vector.load %arg2[%c1, %c0_8, %c0_9] : memref<3x64x64xf32, #tpu.memory_space<vmem>>, vector<1x64x64xf32>
    %15 = vector.shape_cast %14 : vector<1x64x64xf32> to vector<64x64xf32>
    %cst_10 = arith.constant dense<0.000000e+00> : vector<16x64xf32>
    %16 = tpu.matmul %1, %15, %cst_10 {dimension_numbers = #tpu.dot_dimension_numbers<[1], [0], [0], [1], [0, 0, 1, 1], [], []>} : vector<16x64xf32>, vector<64x64xf32>, vector<16x64xf32> -> vector<16x64xf32>
    %17 = arith.addf %13, %16 : vector<16x64xf32>
    %c2 = arith.constant 2 : index
    %c0_11 = arith.constant 0 : index
    %c0_12 = arith.constant 0 : index
    %18 = vector.load %arg2[%c2, %c0_11, %c0_12] : memref<3x64x64xf32, #tpu.memory_space<vmem>>, vector<1x64x64xf32>
    %19 = vector.shape_cast %18 : vector<1x64x64xf32> to vector<64x64xf32>
    %cst_13 = arith.constant dense<0.000000e+00> : vector<16x64xf32>
    %20 = tpu.matmul %6, %19, %cst_13 {dimension_numbers = #tpu.dot_dimension_numbers<[1], [0], [0], [1], [0, 0, 1, 1], [], []>} : vector<16x64xf32>, vector<64x64xf32>, vector<16x64xf32> -> vector<16x64xf32>
    %21 = arith.addf %17, %20 : vector<16x64xf32>
    %cst_14 = arith.constant 0.000000e+00 : f32
    %22 = vector.broadcast %cst_14 : f32 to vector<16x64xf32>
    %23 = arith.maximumf %21, %22 : vector<16x64xf32>
    %cst_15 = arith.constant 0.000000e+00 : f32
    %24 = vector.broadcast %cst_15 : f32 to vector<1x64xf32>
    %25 = vector.extract_strided_slice %23 {offsets = [0, 0], sizes = [15, 64], strides = [1, 1]} : vector<16x64xf32> to vector<15x64xf32>
    %26 = tpu.concatenate %24, %25 in 0 : vector<1x64xf32>, vector<15x64xf32> -> vector<16x64xf32>
    %27 = vector.extract_strided_slice %23 {offsets = [1, 0], sizes = [15, 64], strides = [1, 1]} : vector<16x64xf32> to vector<15x64xf32>
    %28 = tpu.concatenate %27, %24 in 0 : vector<15x64xf32>, vector<1x64xf32> -> vector<16x64xf32>
    %c0_16 = arith.constant 0 : index
    %c0_17 = arith.constant 0 : index
    %29 = vector.load %arg5[%c0_16, %c0_17] : memref<1x64xf32, #tpu.memory_space<vmem>>, vector<1x64xf32>
    %30 = vector.shape_cast %29 : vector<1x64xf32> to vector<1x64xf32>
    %31 = vector.broadcast %30 : vector<1x64xf32> to vector<16x64xf32>
    %c0_18 = arith.constant 0 : index
    %c0_19 = arith.constant 0 : index
    %c0_20 = arith.constant 0 : index
    %32 = vector.load %arg4[%c0_18, %c0_19, %c0_20] : memref<3x64x64xf32, #tpu.memory_space<vmem>>, vector<1x64x64xf32>
    %33 = vector.shape_cast %32 : vector<1x64x64xf32> to vector<64x64xf32>
    %cst_21 = arith.constant dense<0.000000e+00> : vector<16x64xf32>
    %34 = tpu.matmul %26, %33, %cst_21 {dimension_numbers = #tpu.dot_dimension_numbers<[1], [0], [0], [1], [0, 0, 1, 1], [], []>} : vector<16x64xf32>, vector<64x64xf32>, vector<16x64xf32> -> vector<16x64xf32>
    %35 = arith.addf %31, %34 : vector<16x64xf32>
    %c1_22 = arith.constant 1 : index
    %c0_23 = arith.constant 0 : index
    %c0_24 = arith.constant 0 : index
    %36 = vector.load %arg4[%c1_22, %c0_23, %c0_24] : memref<3x64x64xf32, #tpu.memory_space<vmem>>, vector<1x64x64xf32>
    %37 = vector.shape_cast %36 : vector<1x64x64xf32> to vector<64x64xf32>
    %cst_25 = arith.constant dense<0.000000e+00> : vector<16x64xf32>
    %38 = tpu.matmul %23, %37, %cst_25 {dimension_numbers = #tpu.dot_dimension_numbers<[1], [0], [0], [1], [0, 0, 1, 1], [], []>} : vector<16x64xf32>, vector<64x64xf32>, vector<16x64xf32> -> vector<16x64xf32>
    %39 = arith.addf %35, %38 : vector<16x64xf32>
    %c2_26 = arith.constant 2 : index
    %c0_27 = arith.constant 0 : index
    %c0_28 = arith.constant 0 : index
    %40 = vector.load %arg4[%c2_26, %c0_27, %c0_28] : memref<3x64x64xf32, #tpu.memory_space<vmem>>, vector<1x64x64xf32>
    %41 = vector.shape_cast %40 : vector<1x64x64xf32> to vector<64x64xf32>
    %cst_29 = arith.constant dense<0.000000e+00> : vector<16x64xf32>
    %42 = tpu.matmul %28, %41, %cst_29 {dimension_numbers = #tpu.dot_dimension_numbers<[1], [0], [0], [1], [0, 0, 1, 1], [], []>} : vector<16x64xf32>, vector<64x64xf32>, vector<16x64xf32> -> vector<16x64xf32>
    %43 = arith.addf %39, %42 : vector<16x64xf32>
    %cst_30 = arith.constant 0.000000e+00 : f32
    %44 = vector.broadcast %cst_30 : f32 to vector<16x64xf32>
    %45 = arith.maximumf %43, %44 : vector<16x64xf32>
    %46 = arith.addf %45, %1 : vector<16x64xf32>
    %c0_31 = arith.constant 0 : index
    %c0_32 = arith.constant 0 : index
    %c0_33 = arith.constant 0 : index
    %47 = vector.load %arg6[%c0_31, %c0_32, %c0_33] : memref<1x16x64xf32, #tpu.memory_space<vmem>>, vector<1x16x64xf32>
    %48 = vector.shape_cast %47 : vector<1x16x64xf32> to vector<16x64xf32>
    %49 = vector.shape_cast %46 : vector<16x64xf32> to vector<1x16x64xf32>
    tpu.vector_store %arg6[%c0_31, %c0_32, %c0_33], %49 {strides = array<i32>} : memref<1x16x64xf32, #tpu.memory_space<vmem>>, vector<1x16x64xf32>,
    return
  }
  func.func @transform_0(%arg0: i32) -> (i32, i32, i32) {
    %c0_i32 = arith.constant 0 : i32
    %c0_i32_0 = arith.constant 0 : i32
    %c0_i32_1 = arith.constant 0 : i32
    return %arg0, %c0_i32, %c0_i32_0 : i32, i32, i32
  }
  func.func @transform_1(%arg0: i32) -> (i32, i32, i32) {
    %c0_i32 = arith.constant 0 : i32
    %c0_i32_0 = arith.constant 0 : i32
    %c0_i32_1 = arith.constant 0 : i32
    %c0_i32_2 = arith.constant 0 : i32
    return %c0_i32, %c0_i32_0, %c0_i32_1 : i32, i32, i32
  }
  func.func @transform_2(%arg0: i32) -> (i32, i32) {
    %c0_i32 = arith.constant 0 : i32
    %c0_i32_0 = arith.constant 0 : i32
    %c0_i32_1 = arith.constant 0 : i32
    return %c0_i32, %c0_i32_0 : i32, i32
  }
  func.func @transform_3(%arg0: i32) -> (i32, i32, i32) {
    %c0_i32 = arith.constant 0 : i32
    %c0_i32_0 = arith.constant 0 : i32
    %c0_i32_1 = arith.constant 0 : i32
    %c0_i32_2 = arith.constant 0 : i32
    return %c0_i32, %c0_i32_0, %c0_i32_1 : i32, i32, i32
  }
  func.func @transform_4(%arg0: i32) -> (i32, i32) {
    %c0_i32 = arith.constant 0 : i32
    %c0_i32_0 = arith.constant 0 : i32
    %c0_i32_1 = arith.constant 0 : i32
    return %c0_i32, %c0_i32_0 : i32, i32
  }
  func.func @transform_5(%arg0: i32) -> (i32, i32, i32) {
    %c0_i32 = arith.constant 0 : i32
    %c0_i32_0 = arith.constant 0 : i32
    %c0_i32_1 = arith.constant 0 : i32
    return %arg0, %c0_i32, %c0_i32_0 : i32, i32, i32
  }
}

</mosaic_0001>

<bundles_post_ra>
// kernel: tpu_custom_call.1
= control target key start
LH: loop header
LB: loop body
LE: loop exit
PB: predicated region body
PF: predicated region fallthrough
CT: control target
= control target key end

     0   :  { %10 = vsyncpa [#allocation3], 0  ;;  %s1841_s0 = inlined_call_operand.hbm [shape: f32[2,16,64], index: 0, kind: input, shape index: {}]   ;;  %s1842_s1 = inlined_call_operand.hbm [shape: f32[3,64,64], index: 1, kind: input, shape index: {}]   ;;  %s1843_s2 = inlined_call_operand.vmem [shape: f32[1,64], index: 2, kind: input, shape index: {}]   ;;  %s1844_s3 = inlined_call_operand.hbm [shape: f32[3,64,64], index: 3, kind: input, shape index: {}]   ;;  %s1845_s4 = inlined_call_operand.vmem [shape: f32[1,64], index: 4, kind: input, shape index: {}]   ;;  %s1846_s5 = inlined_call_operand.hbm [shape: f32[2,16,64], index: 5, kind: output, shape index: {}]  }
   0x1   :  { %12 = vsyncpa [#allocation3 + $0x1], 0 }
   0x2   :  { %13 = vsyncpa [#allocation6], 0 }
   0x3   :  { %14 = vsyncpa [#allocation4], 0 }
   0x4   :  { %16 = vsyncpa [#allocation4 + $0x1], 0  ;;  %s1554_s18 = smov 0   ;;  %s1556_s19 = smov 0  }
   0x5   :  { %s1558_s20 = smov 0   ;;  %s1560_s21 = smov 0  }
   0x6 LB: > { %s1575_s22 = sadd.s32 4294967295, %s1514_s21   ;;  %s971_s23 = sadd.s32 4294967294, %s1514_s21   ;;  %s1514_s21 = sphi %s1560_s21, %s1866_s21   ;;  %s1510_s20 = sphi %s1558_s20, %s1865_s20   ;;  %s1506_s19 = sphi %s1556_s19, %s1864_s19   ;;  %s1502_s18 = sphi %s1554_s18, %s1863_s18  }
   0x7   : > { %p42_p0 = scmp.ne.s32.totalorder %s1506_s19, %s1502_s18  ;;  %p1847_p1 = scmp.eq.s32.totalorder %s1575_s22, 0 }
   0x8   : > { %p156_p3 = scmp.eq.s32.totalorder %s971_s23, 1  ;;  %p972_p5 = scmp.ge.s32.totalorder %s1514_s21, 1 }
   0x9   : > { %p1584_p4 = por %p1847_p1, %p42_p0  ;;  %p163_p7 = scmp.lt.s32.totalorder %s1514_s21, 3 }
   0xa   : > { %p1589_p6 = por %p156_p3, %p42_p0  ;;  %s1516_s27 = smov [#allocation5]  }
   0xb   : > { %s1850_s24 = scalar_select %p1584_p4, 1, 0 }
   0xc   : > { %s1851_s25 = scalar_select %p1589_p6, 1, 0 }
   0xd   : > { %p1594_p8 = pnand %p972_p5, %p163_p7  ;;  %s175_s28 = sshll.u32 %s1516_s27, 4  ;;  %s1598_s28 = int_to_ptr.vmem [resolvable:$true] %s175_s28 }
   0xe   : > { %s1517_s30 = smov [#allocation7]   ;;  %s1358_s9 = scalar_lea.hbm %s1842_s1, 3072 }
   0xf   : > { %p1299_p9 = pneg %p1594_p8  ;;  %s191_s6 = sshll.u32 %s1517_s30, 4  ;;  %s1609_s6 = int_to_ptr.vmem [resolvable:$true] %s191_s6 }
  0x10   : > { %p1359_p12 = scmp.ne.s32.totalorder %s1842_s1, %s1358_s9  ;;  %p1365_p5 = scmp.lt.u32.totalorder %s1358_s9, %s1842_s1 }
  0x11   : > { %p1605_p11 = pnand %p1299_p9, %p1847_p1 }
  0x13   : > { %p1360_p13 = pneg %p1605_p11 }
  0x15   : > { %p1361_p0 = pnand %p1360_p13, %p1359_p12 }
  0x17   : > { %p1362_p3 = pneg %p1361_p0 }
  0x19   : > { %p1367_p7 = pnand %p1365_p5, %p1362_p3 }
  0x1b   : > { %1370 = shalt.err (!%p1367_p7)
}
  0x1c   : > { %s1371_s14 = scalar_lea.vmem %s1598_s28, 3072  ;;  %p1379_p2 = scmp.lt.s32.totalorder %s1598_s28, %s1598_s28 }
  0x1d   : > { %p1372_p9 = scmp.ne.s32.totalorder %s1598_s28, %s1371_s14  ;;  %p1380_p12 = scmp.lt.s32.totalorder %s1371_s14, %s1371_s14 }
  0x1f   : > { %p1374_p10 = pnand %p1372_p9, %p1360_p13  ;;  %p1381_p0 = por %p1380_p12, %p1379_p2 }
  0x21   : > { %p1375_p1 = pneg %p1374_p10 }
  0x23   : > { %p1382_p6 = pnand %p1381_p0, %p1375_p1 }
  0x25   : > { %1385 = shalt.err (!%p1382_p6)
}
  0x26   : > { %s1518_s15 = smov 128   ;;  %s1519_s16 = smov 8  }
  0x27   : > { %1302 = dma.hbm_to_vmem [thread:$0]  (!%p1605_p11), %s1842_s1, 3072, %s1598_s28, [#allocation6], %s1518_s15, %s1518_s15, %s1519_s16  }
  0x28   : > { %s1386_s7 = scalar_lea.hbm %s1844_s3, 3072 }
  0x29   : > { %p1387_p1 = scmp.ne.s32.totalorder %s1844_s3, %s1386_s7  ;;  %p1393_p10 = scmp.lt.u32.totalorder %s1386_s7, %s1844_s3 }
  0x2b   : > { %p1389_p2 = pnand %p1387_p1, %p1360_p13 }
  0x2d   : > { %p1390_p6 = pneg %p1389_p2 }
  0x2f   : > { %p1395_p3 = pnand %p1393_p10, %p1390_p6 }
  0x31   : > { %1398 = shalt.err (!%p1395_p3)
}
  0x32   : > { %s1399_s28 = scalar_lea.vmem %s1609_s6, 3072  ;;  %p1407_p12 = scmp.lt.s32.totalorder %s1609_s6, %s1609_s6 }
  0x33   : > { %p1400_p5 = scmp.ne.s32.totalorder %s1609_s6, %s1399_s28  ;;  %p1408_p0 = scmp.lt.s32.totalorder %s1399_s28, %s1399_s28 }
  0x35   : > { %p1402_p7 = pnand %p1400_p5, %p1360_p13  ;;  %p1409_p1 = por %p1408_p0, %p1407_p12 }
  0x37   : > { %p1403_p9 = pneg %p1402_p7 }
  0x39   : > { %p1410_p2 = pnand %p1409_p1, %p1403_p9 }
  0x3b   : > { %1413 = shalt.err (!%p1410_p2)
}
  0x3c   : > { %1305 = dma.hbm_to_vmem [thread:$0]  (!%p1605_p11), %s1844_s3, 3072, %s1609_s6, [#allocation6], %s1518_s15, %s1518_s15, %s1519_s16  }
  0x3d   : > { %s1670_s29 = sadd.s32 1, %s1514_s21   ;;  %s29_s14 = sadd.s32 1, %s1510_s20 }
  0x3e   : > { %s26_s17 = ssub.s32 %s1514_s21, %s1670_s29  ;;  %p36_p13 = scmp.ne.s32.totalorder %s1510_s20, %s1506_s19 }
  0x3f   : > { %p27_p6 = scmp.eq.s32.totalorder %s26_s17, 0  ;;  %p37_p10 = scmp.eq.s32.totalorder %s1514_s21, 0 }
  0x40   : > { %p1854_p3 = scmp.eq.s32.totalorder %s1575_s22, 1  ;;  %p1316_p7 = scmp.lt.s32.totalorder %s1514_s21, 2 }
  0x41   : > { %s1686_s27 = scalar_select %p27_p6, %s1510_s20, %s29_s14  }
  0x42   : > { %p1680_p5 = por %p1854_p3, %p36_p13  ;;  %p38_p9 = por %p37_p10, %p36_p13 }
  0x43   : > { %s208_s30 = sand.u32 1, %s1510_s20   ;;  %s1003_s6 = sshll.u32 %s1514_s21, 8 }
  0x44   : > { %s1855_s23 = scalar_select %p1680_p5, 1, 0 }
  0x45   : > { %s976_s7 = sshll.u32 %s208_s30, 4  ;;  %s1693_s10 = scalar_lea.hbm %s1841_s0, %s1003_s6 }
  0x46   : > { %s212_s11 = scalar_lea.vmem [#allocation2], %s976_s7  ;;  %p1697_p11 = pnand %p1316_p7, %p38_p9 }
  0x47   : > { %s219_s28 = sshll.u32 %s212_s11, 4  ;;  %s1701_s13 = scalar_lea.sflag [#allocation3], %s208_s30  ;;  %s1695_s28 = int_to_ptr.vmem [resolvable:$true] %s219_s28 }
  0x48   : > { %s1414_s14 = scalar_lea.hbm %s1693_s10, 256  ;;  %p1416_p0 = pneg %p1697_p11 }
  0x49   : > { %p1415_p12 = scmp.ne.s32.totalorder %s1693_s10, %s1414_s14  ;;  %s1419_s6 = scalar_lea.hbm %s1841_s0, 512 }
  0x4a   : > { %p1420_p13 = scmp.lt.u32.totalorder %s1693_s10, %s1841_s0  ;;  %p1421_p6 = scmp.lt.u32.totalorder %s1419_s6, %s1414_s14 }
  0x4b   : > { %p1417_p1 = pnand %p1416_p0, %p1415_p12  ;;  %p1423_p3 = scmp.lt.u32.totalorder %s1414_s14, %s1693_s10 }
  0x4c   : > { %p1422_p10 = por %p1421_p6, %p1420_p13 }
  0x4d   : > { %p1418_p2 = pneg %p1417_p1 }
  0x4e   : > { %p1424_p7 = por %p1423_p3, %p1422_p10 }
  0x50   : > { %p1425_p9 = pnand %p1424_p7, %p1418_p2 }
  0x52   : > { %1428 = shalt.err (!%p1425_p9)
}
  0x53   : > { %s1429_s30 = scalar_lea.vmem %s1695_s28, 256  ;;  %s1520_s11 = smov [#allocation2]  }
  0x54   : > { %p1430_p12 = scmp.ne.s32.totalorder %s1695_s28, %s1429_s30  ;;  %s1434_s17 = sshll.u32 %s1520_s11, 4  ;;  %s1435_s17 = int_to_ptr.vmem [resolvable:$false] %s1434_s17 }
  0x55   : > { %s1436_s7 = scalar_lea.vmem %s1435_s17, 512  ;;  %p1437_p4 = scmp.lt.s32.totalorder %s1695_s28, %s1435_s17 }
  0x56   : > { %p1432_p1 = pnand %p1430_p12, %p1416_p0  ;;  %p1438_p13 = scmp.lt.s32.totalorder %s1436_s7, %s1429_s30 }
  0x58   : > { %p1433_p5 = pneg %p1432_p1  ;;  %p1439_p6 = por %p1438_p13, %p1437_p4 }
  0x5a   : > { %p1440_p10 = pnand %p1439_p6, %p1433_p5 }
  0x5c   : > { %1443 = shalt.err (!%p1440_p10)
}
  0x5d   : > { %1309 = dma.hbm_to_vmem [thread:$0]  (!%p1697_p11), %s1693_s10, 256, %s1695_s28, %s1701_s13, %s1518_s15, %s1518_s15, %s1519_s16  }
  0x5e   : > { %231 = sbr.rel (%p1594_p8) target bundleno = 643 (0x283), region = 40  ;;  %s1735_s14 = sand.u32 (!%p1594_p8), 1, %s1506_s19  }
  0x5f   : > { %s980_s6 = sshll.u32 (!%p1594_p8), %s1735_s14, 4  ;;  %s234_s8 = scalar_lea.sflag (!%p1594_p8), [#allocation3], %s1735_s14 }
  0x60   : > { %s237_s12 = scalar_lea.vmem (!%p1594_p8), [#allocation2], %s980_s6  ;;  %p1857_p4 = scmp.ne.s32.totalorder (!%p1594_p8), %s1850_s24, 0 }
  0x65   : > { %1489 = dma.done.wait (%p1857_p4), %s234_s8, 256  }
  0x66   : > { %1491 = vsyncadd (%p1857_p4), %s234_s8, 4294967040  ;;  %p1858_p5 = scmp.eq.s32.totalorder %s1575_s22, 0 }
  0x68   : > { %1493 = dma.done.wait (%p1858_p5), [#allocation6], 6144   ;;  %p1859_p8 = pmov %p1858_p5 }
  0x69   : > { %v295_v0 = vld [vmem:[#allocation5] sm:$0xff]  ;;  %v296_v1 = vld [vmem:[#allocation5 + $0x8] sm:$0xff]  ;;  %v297_v2 = vld [vmem:[#allocation5 + $0x10] sm:$0xff]  ;;  %vm276_vm0 = vcmask 1040384   ;;  %vm303_vm1 = vcmask 523264   ;;  %vm282_vm2 = vcmask 1046528  }
  0x6a   : > { %1495 = vsyncadd (%p1859_p8), [#allocation6], 4294961152  ;;  %v1179_v3 = vpack.c.bf16 %v296_v1, %v295_v0  ;;  %v298_v4 = vld [vmem:[#allocation5 + $0x18] sm:$0xff]  ;;  %v299_v6 = vld [vmem:[#allocation5 + $0x20] sm:$0xff]  ;;  %s1004_s10 = sshll.u32 %s1575_s22, 8  ;;  %s271_s28 = scalar_lea.vmem [#allocation8], %s980_s6 }
  0x6b   : > { %v1183_v5 = vpack.c.bf16 %v298_v4, %v297_v2  ;;  %v300_v7 = vld [vmem:[#allocation5 + $0x28] sm:$0xff]  ;;  %v1749_v8 = vld [vmem:[%s237_s12] sm:$0xff]  ;;  %v302_v13 = vld [vmem:[#allocation5 + $0x38] sm:$0xff]  ;;  %s879_s13 = sshll.u32 %s271_s28, 4  ;;  %s1792_s11 = scalar_lea.hbm %s1846_s5, %s1004_s10  ;;  %s1794_s13 = int_to_ptr.vmem [resolvable:$true] %s879_s13 }
  0x6c   : > { %1180 = vmatprep.subr.bf16.mxu0 %v1179_v3  ;;  %v277_v9 = vrot.slane %v1749_v8, 7  ;;  %v1187_v10 = vpack.c.bf16 %v300_v7, %v299_v6  ;;  %v301_v12 = vld [vmem:[#allocation5 + $0x30] sm:$0xff]  ;;  %v1754_v14 = vld [vmem:[%s237_s12 + $0x8] sm:$0xff]  ;;  %v588_v15 = vld [vmem:[#allocation7] sm:$0xff]  ;;  %v283_v39 = vrot.slane %v1749_v8, 1  ;;  %s866_s22 = scalar_lea.sflag [#allocation4], %s1735_s14 }
  0x6d   : > { %1182 = vmatpush3.bf16.msra.mxu0 %v1179_v3  ;;  %v1191_v16 = vpack.c.bf16 %v302_v13, %v301_v12  ;;  %v589_v17 = vld [vmem:[#allocation7 + $0x8] sm:$0xff]  ;;  %v590_v18 = vld [vmem:[#allocation7 + $0x10] sm:$0xff]  ;;  %v591_v19 = vld [vmem:[#allocation7 + $0x18] sm:$0xff]  ;;  %v278_v24 = vrot.slane %v1754_v14, 7  ;;  %v284_v40 = vrot.slane %v1754_v14, 1  ;;  %s1444_s17 = scalar_lea.vmem %s1794_s13, 256 }
  0x6e   : > { %1184 = vmatprep.subr.bf16.mxu0 %v1183_v5  ;;  %v281_v11 = vsel %vm276_vm0, 0.0, %v277_v9  ;;  %v387_v20 = vld [vmem:[#allocation5 + $0x40] sm:$0xff]  ;;  %v388_v21 = vld [vmem:[#allocation5 + $0x48] sm:$0xff]  ;;  %v1227_v22 = vpack.c.bf16 %v589_v17, %v588_v15  ;;  %v1231_v23 = vpack.c.bf16 %v591_v19, %v590_v18  ;;  %v389_v26 = vld [vmem:[#allocation5 + $0x50] sm:$0xff]  ;;  %p1445_p11 = scmp.ne.s32.totalorder %s1794_s13, %s1444_s17  ;;  %p1860_p0 = scmp.ne.s32.totalorder %s1855_s23, 0 }
  0x6f   : > { %1081 = vmatprep.mubr.msk.f32.mxu0 %vm303_vm1, %v281_v11  ;;  %v1195_v25 = vpack.c.bf16 %v388_v21, %v387_v20  ;;  %v390_v27 = vld [vmem:[#allocation5 + $0x58] sm:$0xff]  ;;  %v279_v28 = vsel %vm276_vm0, %v277_v9, %v278_v24  ;;  %v391_v30 = vld [vmem:[#allocation5 + $0x60] sm:$0xff]  ;;  %v392_v31 = vld [vmem:[#allocation5 + $0x68] sm:$0xff]  ;;  %v285_v44 = vsel %vm282_vm2, %v283_v39, %v284_v40  ;;  %v287_v51 = vsel %vm282_vm2, %v284_v40, 0.0  ;;  %s1521_s7 = smov [#allocation8]  }
  0x70   : > { %1228 = vmatprep.subr.bf16.mxu1 %v1227_v22  ;;  %v1199_v29 = vpack.c.bf16 %v390_v27, %v389_v26  ;;  %v1203_v32 = vpack.c.bf16 %v392_v31, %v391_v30  ;;  %v393_v33 = vld [vmem:[#allocation5 + $0x70] sm:$0xff]  ;;  %v394_v34 = vld [vmem:[#allocation5 + $0x78] sm:$0xff]  ;;  %v477_v36 = vld [vmem:[#allocation5 + $0x80] sm:$0xff]  ;;  %p1446_p2 = pnand %p1445_p11, %p1860_p0  ;;  %s1448_s6 = sshll.u32 %s1521_s7, 4  ;;  %s1449_s6 = int_to_ptr.vmem [resolvable:$false] %s1448_s6 }
  0x71   : > { %1186 = vmatpush3.bf16.msra.mxu0 %v1183_v5  ;;  %1230 = vmatpush3.bf16.msra.mxu1 %v1227_v22  ;;  %v1207_v35 = vpack.c.bf16 %v394_v34, %v393_v33  ;;  %v478_v37 = vld [vmem:[#allocation5 + $0x88] sm:$0xff]  ;;  %v479_v41 = vld [vmem:[#allocation5 + $0x90] sm:$0xff]  ;;  %v480_v42 = vld [vmem:[#allocation5 + $0x98] sm:$0xff]  ;;  %s1450_s8 = scalar_lea.vmem %s1449_s6, 512  ;;  %p1451_p7 = scmp.lt.s32.totalorder %s1794_s13, %s1449_s6 }
  0x72   : > { %1188 = vmatprep.subr.bf16.mxu0 %v1187_v10  ;;  %1232 = vmatprep.subr.bf16.mxu1 %v1231_v23  ;;  %v1211_v38 = vpack.c.bf16 %v478_v37, %v477_v36  ;;  %v1215_v43 = vpack.c.bf16 %v480_v42, %v479_v41  ;;  %v481_v45 = vld [vmem:[#allocation5 + $0xa0] sm:$0xff]  ;;  %v482_v46 = vld [vmem:[#allocation5 + $0xa8] sm:$0xff]  ;;  %v483_v48 = vld [vmem:[#allocation5 + $0xb0] sm:$0xff]  ;;  %p1447_p3 = pneg %p1446_p2  ;;  %p1452_p9 = scmp.lt.s32.totalorder %s1450_s8, %s1444_s17 }
  0x73   : > { %v1219_v47 = vpack.c.bf16 %v482_v46, %v481_v45  ;;  %v484_v49 = vld [vmem:[#allocation5 + $0xb8] sm:$0xff]  ;;  %v592_v52 = vld [vmem:[#allocation7 + $0x20] sm:$0xff]  ;;  %v593_v53 = vld [vmem:[#allocation7 + $0x28] sm:$0xff] }
  0x74   : > { %v1223_v50 = vpack.c.bf16 %v484_v49, %v483_v48  ;;  %v1235_v54 = vpack.c.bf16 %v593_v53, %v592_v52  ;;  %v594_v55 = vld [vmem:[#allocation7 + $0x30] sm:$0xff]  ;;  %v595_v56 = vld [vmem:[#allocation7 + $0x38] sm:$0xff]  ;;  %v679_v58 = vld [vmem:[#allocation7 + $0x40] sm:$0xff]  ;;  %p1453_p12 = por %p1452_p9, %p1451_p7 }
  0x75   : > { %1190 = vmatpush3.bf16.msra.mxu0 %v1187_v10  ;;  %1234 = vmatpush3.bf16.msra.mxu1 %v1231_v23  ;;  %v1239_v57 = vpack.c.bf16 %v595_v56, %v594_v55  ;;  %v680_v59 = vld [vmem:[#allocation7 + $0x48] sm:$0xff]  ;;  %v984_v61 = vld [vmem:[%s1843_s2] ss:$0 sm:$0xff]  ;;  %v681_v6 = vld [vmem:[#allocation7 + $0x50] sm:$0xff] }
  0x76   : > { %1192 = vmatprep.subr.bf16.mxu0 %v1191_v16  ;;  %1236 = vmatprep.subr.bf16.mxu1 %v1235_v54  ;;  %v1243_v60 = vpack.c.bf16 %v680_v59, %v679_v58  ;;  %v682_v7 = vld [vmem:[#allocation7 + $0x58] sm:$0xff]  ;;  %v684_v17 = vld [vmem:[#allocation7 + $0x68] sm:$0xff]  ;;  %v685_v19 = vld [vmem:[#allocation7 + $0x70] sm:$0xff]  ;;  %p1454_p1 = pnand %p1453_p12, %p1447_p3 }
  0x77   : > { %v1247_v13 = vpack.c.bf16 %v682_v7, %v681_v6  ;;  %v686_v20 = vld [vmem:[#allocation7 + $0x78] sm:$0xff]  ;;  %v769_v22 = vld [vmem:[#allocation7 + $0x80] sm:$0xff]  ;;  %v770_v23 = vld [vmem:[#allocation7 + $0x88] sm:$0xff] }
  0x78   : > { %v1255_v21 = vpack.c.bf16 %v686_v20, %v685_v19  ;;  %v1259_v24 = vpack.c.bf16 %v770_v23, %v769_v22  ;;  %v772_v26 = vld [vmem:[#allocation7 + $0x98] sm:$0xff]  ;;  %v775_v31 = vld [vmem:[#allocation7 + $0xb0] sm:$0xff] }
  0x79   : > { %1194 = vmatpush3.bf16.msra.mxu0 %v1191_v16  ;;  %1238 = vmatpush3.bf16.msra.mxu1 %v1235_v54  ;;  %v683_v16 = vld [vmem:[#allocation7 + $0x60] sm:$0xff] }
  0x7a   : > { %1196 = vmatprep.subr.bf16.mxu0 %v1195_v25  ;;  %1240 = vmatprep.subr.bf16.mxu1 %v1239_v57  ;;  %v1251_v18 = vpack.c.bf16 %v684_v17, %v683_v16 }
  0x7c   : > { %1082 = vmatmul.mubr.msk.f32.vlgmr.msra.gmra.mrb[0].mxu0 %vm303_vm1, %v279_v28  ;;  %v773_v28 = vld [vmem:[#allocation7 + $0xa0] sm:$0xff] }
  0x7d   : > { %1198 = vmatpush3.bf16.msra.mxu0 %v1195_v25  ;;  %1100 = vmatprep.mubr.msk.f32.mxu0 %vm303_vm1, %v1749_v8  ;;  %v771_v25 = vld [vmem:[#allocation7 + $0x90] sm:$0xff] }
  0x7e   : > { %1200 = vmatprep.subr.bf16.mxu0 %v1199_v29  ;;  %1242 = vmatpush3.bf16.msra.mxu1 %v1239_v57  ;;  %v1263_v27 = vpack.c.bf16 %v772_v26, %v771_v25 }
  0x7f   : > { %1244 = vmatprep.subr.bf16.mxu1 %v1243_v60 }
  0x81   : > { %1202 = vmatpush3.bf16.msra.mxu0 %v1199_v29  ;;  %v774_v29 = vld [vmem:[#allocation7 + $0xa8] sm:$0xff] }
  0x82   : > { %1204 = vmatprep.subr.bf16.mxu0 %v1203_v32  ;;  %v1267_v30 = vpack.c.bf16 %v774_v29, %v773_v28 }
  0x85   : > { %1206 = vmatpush3.bf16.msra.mxu0 %v1203_v32  ;;  %v776_v32 = vld [vmem:[#allocation7 + $0xb8] sm:$0xff] }
  0x86   : > { %1208 = vmatprep.subr.bf16.mxu0 %v1207_v35  ;;  %v1271_v33 = vpack.c.bf16 %v776_v32, %v775_v31 }
  0x89   : > { %1210 = vmatpush3.bf16.msra.mxu0 %v1207_v35  ;;  %v991_v35 = vld [vmem:[%s1845_s4] ss:$0 sm:$0xff] }
  0x8a   : > { %1212 = vmatprep.subr.bf16.mxu0 %v1211_v38 }
  0x8c   : > { %1101 = vmatmul.mubr.msk.f32.vlgmr.msra.gmra.mrb[0].mxu0 %vm303_vm1, %v1754_v14 }
  0x8d   : > { %1214 = vmatpush3.bf16.msra.mxu0 %v1211_v38  ;;  %1119 = vmatprep.mubr.msk.f32.mxu0 %vm303_vm1, %v285_v44 }
  0x8e   : > { %1216 = vmatprep.subr.bf16.mxu0 %v1215_v43 }
  0x91   : > { %1218 = vmatpush3.bf16.msra.mxu0 %v1215_v43 }
  0x92   : > { %1220 = vmatprep.subr.bf16.mxu0 %v1219_v47 }
  0x95   : > { %1222 = vmatpush3.bf16.msra.mxu0 %v1219_v47 }
  0x96   : > { %1224 = vmatprep.subr.bf16.mxu0 %v1223_v50 }
  0x99   : > { %1226 = vmatpush3.bf16.msra.mxu0 %v1223_v50 }
  0x9c   : > { %1120 = vmatmul.mubr.msk.f32.vlgmr.msra.gmra.mrb[0].mxu0 %vm303_vm1, %v287_v51 }
 0x16f   : > { %v1121_v62 = vpop.f32.mrb[0].mxu0 }
 0x170   : > { %v1275_v63 = vadd.f32 %v1121_v62, %v984_v61  ;;  %v556_v0 = vpop.f32.mrb[1].mxu0 }
 0x171   : > { %v1276_v1 = vadd.f32 %v984_v61, %v556_v0 }
 0x172   : > { %v568_v2 = vmax.f32 %v1275_v63, 0.0 }
 0x173   : > { %v567_v3 = vmax.f32 %v1276_v1, 0.0 }
 0x174   : > { %v572_v4 = vrot.slane %v568_v2, 7  ;;  %v577_v5 = vrot.slane %v568_v2, 1 }
 0x175   : > { %v576_v9 = vrot.slane %v567_v3, 1  ;;  %v571_v10 = vrot.slane %v567_v3, 7 }
 0x176   : > { %v580_v34 = vsel %vm282_vm2, %v577_v5, 0.0 }
 0x177   : > { %v575_v11 = vsel %vm276_vm0, 0.0, %v571_v10  ;;  %v573_v12 = vsel %vm276_vm0, %v571_v10, %v572_v4  ;;  %v578_v15 = vsel %vm282_vm2, %v576_v9, %v577_v5 }
 0x178   : > { %1138 = vmatprep.mubr.msk.f32.mxu1 %vm303_vm1, %v575_v11 }
 0x179   : > { %1139 = vmatmul.mubr.msk.f32.vlgmr.msra.gmra.mrb[0].mxu1 %vm303_vm1, %v573_v12 }
 0x17a   : > { %1246 = vmatpush3.bf16.msra.mxu1 %v1243_v60  ;;  %1157 = vmatprep.mubr.msk.f32.mxu1 %vm303_vm1, %v567_v3 }
 0x17b   : > { %1248 = vmatprep.subr.bf16.mxu1 %v1247_v13 }
 0x17e   : > { %1250 = vmatpush3.bf16.msra.mxu1 %v1247_v13 }
 0x17f   : > { %1252 = vmatprep.subr.bf16.mxu1 %v1251_v18 }
 0x182   : > { %1254 = vmatpush3.bf16.msra.mxu1 %v1251_v18 }
 0x183   : > { %1256 = vmatprep.subr.bf16.mxu1 %v1255_v21 }
 0x186   : > { %1258 = vmatpush3.bf16.msra.mxu1 %v1255_v21 }
 0x187   : > { %1260 = vmatprep.subr.bf16.mxu1 %v1259_v24 }
 0x189   : > { %1158 = vmatmul.mubr.msk.f32.vlgmr.msra.gmra.mrb[0].mxu1 %vm303_vm1, %v568_v2 }
 0x18a   : > { %1262 = vmatpush3.bf16.msra.mxu1 %v1259_v24  ;;  %1176 = vmatprep.mubr.msk.f32.mxu1 %vm303_vm1, %v578_v15 }
 0x18b   : > { %1264 = vmatprep.subr.bf16.mxu1 %v1263_v27 }
 0x18e   : > { %1266 = vmatpush3.bf16.msra.mxu1 %v1263_v27 }
 0x18f   : > { %1268 = vmatprep.subr.bf16.mxu1 %v1267_v30 }
 0x192   : > { %1270 = vmatpush3.bf16.msra.mxu1 %v1267_v30 }
 0x193   : > { %1272 = vmatprep.subr.bf16.mxu1 %v1271_v33 }
 0x196   : > { %1274 = vmatpush3.bf16.msra.mxu1 %v1271_v33 }
 0x199   : > { %1177 = vmatmul.mubr.msk.f32.vlgmr.msra.gmra.mrb[0].mxu1 %vm303_vm1, %v580_v34 }
 0x26c   : > { %v1178_v36 = vpop.f32.mrb[0].mxu1 }
 0x26d   : > { %v1277_v37 = vadd.f32 %v1178_v36, %v991_v35  ;;  %v848_v38 = vpop.f32.mrb[1].mxu1 }
 0x26e   : > { %v1278_v39 = vadd.f32 %v991_v35, %v848_v38 }
 0x26f   : > { %v860_v40 = vmax.f32 %v1277_v37, 0.0 }
 0x270   : > { %v859_v41 = vmax.f32 %v1278_v39, 0.0 }
 0x271   : > { %v862_v42 = vadd.f32 %v860_v40, %v1754_v14 }
 0x272   : > { %v861_v43 = vadd.f32 %v859_v41, %v1749_v8 }
 0x273   : > { %864 = vst.msk [vmem:[%s271_s28 + $0x8] sm:$0xff] %vm303_vm1, %v862_v42 }
 0x274   : > { %863 = vst.msk [vmem:[%s271_s28] sm:$0xff] %vm303_vm1, %v861_v43 }
 0x275   : > { %1457 = shalt.err (!%p1454_p1)
}
 0x276   : > { %s1458_s12 = scalar_lea.hbm %s1792_s11, 256  ;;  %s1462_s15 = scalar_lea.hbm %s1846_s5, 512 }
 0x277   : > { %p1459_p13 = scmp.ne.s32.totalorder %s1792_s11, %s1458_s12  ;;  %p1463_p4 = scmp.lt.u32.totalorder %s1792_s11, %s1846_s5 }
 0x278   : > { %p1464_p5 = scmp.lt.u32.totalorder %s1462_s15, %s1458_s12  ;;  %p1466_p11 = scmp.lt.u32.totalorder %s1458_s12, %s1792_s11 }
 0x279   : > { %p1460_p6 = pnand %p1459_p13, %p1860_p0 }
 0x27a   : > { %p1465_p8 = por %p1464_p5, %p1463_p4 }
 0x27b   : > { %p1461_p10 = pneg %p1460_p6 }
 0x27c   : > { %p1467_p2 = por %p1466_p11, %p1465_p8 }
 0x27e   : > { %p1468_p3 = pnand %p1467_p2, %p1461_p10 }
 0x280   : > { %1471 = shalt.err (!%p1468_p3)
}
 0x281   : > { %s1522_s28 = smov 128   ;;  %s1523_s9 = smov 8  }
 0x282   : > { %1297 = dma.vmem_to_hbm [thread:$0]  (%p1860_p0), %s1794_s13, 256, %s1792_s11, %s866_s22, %s1522_s28, %s1522_s28, %s1523_s9  }
 0x283 PF: > { %s894_s30 = sand.u32 1, %s1502_s18   ;;  %p1861_p7 = scmp.ne.s32.totalorder %s1851_s25, 0 }
 0x284   : > { %p1862_p9 = scmp.ge.s32.totalorder %s1514_s21, 2  ;;  %s895_s17 = scalar_lea.sflag [#allocation4], %s894_s30 }
 0x286   : > { %p1311_p12 = pnand %p1862_p9, %p1861_p7 }
 0x288   : > { %1497 = dma.done.wait (!%p1311_p12), %s895_s17, 256  }
 0x289   : > { %1499 = vsyncadd (!%p1311_p12), %s895_s17, 4294967040  ;;  %p19_p1 = scmp.ge.s32.totalorder %s1670_s29, 4   ;;  %s1863_s18 = smov %s1506_s19 }
 0x28a   : > { %s1864_s19 = smov %s1510_s20  ;;  %s1865_s20 = smov %s1686_s27 }
 0x28b   : > { %s1866_s21 = smov %s1670_s29  ;;  %21 = sbr.rel (!%p19_p1) target bundleno = 6 (0x6), region = 97 }
 0x292   :  { %900 = vsyncpa [#allocation3], 1 }
 0x293   :  { %902 = vsyncpa [#allocation3 + $0x1], 1 }
 0x294   :  { %903 = vsyncpa [#allocation6], 1 }
 0x295   :  { %904 = vsyncpa [#allocation4], 1 }
 0x296   :  { %906 = vsyncpa [#allocation4 + $0x1], 1 }

</bundles_post_ra>
